<compile_context>
chip_gen: v6e
topology: v6e:2x2x1
jax: 0.10.0
libtpu: 0.0.40
codegen_flags: <defaults>
</compile_context>

<pallas_src>
import functools

import jax
import jax.numpy as jnp
from jax.experimental import pallas as pl
from jax.experimental.pallas import tpu as pltpu

NEG_SLOPE = 0.01  # nn.LeakyReLU() default


def _leaky_relu(x):
    return jnp.where(x >= 0, x, NEG_SLOPE * x)


def _fc_block_kernel(*refs, keep_threshold, inv_keep, apply_dropout):
    if apply_dropout:
        x_ref, w1_ref, b1_ref, w2_ref, b2_ref, bits_ref, o_ref, h_ref = refs
    else:
        x_ref, w1_ref, b1_ref, w2_ref, b2_ref, o_ref, h_ref = refs
        bits_ref = None

    # First Linear + LeakyReLU: computed once per batch tile (n == 0) into a resident
    # VMEM scratch and reused for every output-feature tile of the second matmul.
    @pl.when(pl.program_id(1) == 0)
    def _():
        h = jnp.dot(x_ref[...], w1_ref[...], preferred_element_type=jnp.float32)
        h = h + b1_ref[...].astype(jnp.float32)
        h_ref[...] = _leaky_relu(h).astype(h_ref.dtype)

    # Second Linear + LeakyReLU on the current output-feature tile.
    z = jnp.dot(h_ref[...], w2_ref[...], preferred_element_type=jnp.float32)
    z = z + b2_ref[...].astype(jnp.float32)
    z = _leaky_relu(z)

    if apply_dropout:
        # Inverted dropout: keep with prob (1 - do) via integer-threshold compare.
        keep = bits_ref[...] >= jnp.uint32(keep_threshold)
        z = jnp.where(keep, z * jnp.float32(inv_keep), jnp.float32(0.0))

    o_ref[...] = z.astype(o_ref.dtype)


def fc_block(x, w1, b1, w2, b2, *, do=0.2, training=False, seed=0,
             block_b=None, block_n=None):
    """x: [B, in_f]; w1: [in_f, out_f]; b1: [1, out_f]; w2: [out_f, out_f]; b2: [1, out_f]."""
    B, in_f = x.shape
    out_f = w1.shape[1]
    apply_dropout = bool(training) and float(do) > 0.0

    if block_b is None:
        block_b = B if B <= 512 else 512            # multiple of 8 (or the full dim)
    if block_n is None:
        block_n = out_f if out_f <= 2048 else 512   # multiple of 128 (or the full dim)
    grid = (pl.cdiv(B, block_b), pl.cdiv(out_f, block_n))

    h_dtype = w2.dtype  # second matmul runs at the weights' native dtype (bf16-friendly)
    keep_threshold = min(int(round(float(do) * 4294967296.0)), 4294967295)
    inv_keep = 1.0 / (1.0 - float(do)) if apply_dropout else 1.0

    kernel = functools.partial(
        _fc_block_kernel,
        keep_threshold=keep_threshold,
        inv_keep=inv_keep,
        apply_dropout=apply_dropout,
    )

    in_specs = [
        pl.BlockSpec((block_b, in_f), lambda i, n: (i, 0)),    # x batch tile
        pl.BlockSpec((in_f, out_f), lambda i, n: (0, 0)),      # W1 (resident)
        pl.BlockSpec((1, out_f), lambda i, n: (0, 0)),         # b1
        pl.BlockSpec((out_f, block_n), lambda i, n: (0, n)),   # W2 N-tile
        pl.BlockSpec((1, block_n), lambda i, n: (0, n)),       # b2 N-tile
    ]
    args = [x, w1, b1, w2, b2]
    if apply_dropout:
        # Random bits generated host/XLA-side (portable; no in-kernel PRNG needed).
        bits = jax.random.bits(jax.random.PRNGKey(seed), (B, out_f), dtype=jnp.uint32)
        in_specs.append(pl.BlockSpec((block_b, block_n), lambda i, n: (i, n)))
        args.append(bits)

    # VMEM budget: double-buffered inputs/outputs + h scratch, with headroom,
    # clamped to 64 MiB so the limit is valid on v7x as well as v5e/v6e.
    x_isz = jnp.dtype(x.dtype).itemsize
    w_isz = jnp.dtype(w1.dtype).itemsize
    est = 2 * (block_b * in_f * x_isz + in_f * out_f * w_isz + out_f * w_isz
               + out_f * block_n * w_isz + block_n * w_isz
               + block_b * block_n * x_isz)
    if apply_dropout:
        est += 2 * block_b * block_n * 4
    est += block_b * out_f * jnp.dtype(h_dtype).itemsize
    vmem_limit = int(min(64 * 1024 * 1024, max(32 * 1024 * 1024, est + (8 << 20))))

    flops = 2 * B * (in_f * out_f + out_f * out_f)
    bytes_accessed = sum(int(a.size) * jnp.dtype(a.dtype).itemsize for a in args)
    bytes_accessed += B * out_f * x_isz  # output

    return pl.pallas_call(
        kernel,
        out_shape=jax.ShapeDtypeStruct((B, out_f), x.dtype),
        grid=grid,
        in_specs=in_specs,
        out_specs=pl.BlockSpec((block_b, block_n), lambda i, n: (i, n)),
        scratch_shapes=[pltpu.VMEM((block_b, out_f), h_dtype)],
        compiler_params=pltpu.CompilerParams(
            dimension_semantics=("parallel", "arbitrary"),
            vmem_limit_bytes=vmem_limit,
        ),
        cost_estimate=pl.CostEstimate(
            flops=flops, transcendentals=0, bytes_accessed=bytes_accessed),
    )(*args)


def init_fc_block_params(key, in_features, out_features, dtype=jnp.float32):
    """Deterministic init matching PyTorch Linear's U(-1/sqrt(fan_in), 1/sqrt(fan_in))."""
    k1, k2, k3, k4 = jax.random.split(key, 4)
    bound1 = 1.0 / (in_features ** 0.5)
    bound2 = 1.0 / (out_features ** 0.5)
    # Stored pre-transposed: [in, out].
    w1 = jax.random.uniform(k1, (in_features, out_features), dtype, -bound1, bound1)
    b1 = jax.random.uniform(k2, (1, out_features), dtype, -bound1, bound1)
    w2 = jax.random.uniform(k3, (out_features, out_features), dtype, -bound2, bound2)
    b2 = jax.random.uniform(k4, (1, out_features), dtype, -bound2, bound2)
    return w1, b1, w2, b2


def fc_block_ref(x, w1, b1, w2, b2):
    """Pure-JAX reference (eval mode: dropout is identity)."""
    h = _leaky_relu(jnp.dot(x, w1, precision=jax.lax.Precision.HIGHEST) + b1)
    z = _leaky_relu(jnp.dot(h, w2, precision=jax.lax.Precision.HIGHEST) + b2)
    return z


if __name__ == "__main__":
    key = jax.random.PRNGKey(0)
    kx, kp = jax.random.split(key)

    # Small but lane-dense shapes (feature dims are multiples of 128).
    B, IN_F, OUT_F = 8, 128, 128
    x = jax.random.normal(kx, (B, IN_F), dtype=jnp.float32)
    w1, b1, w2, b2 = init_fc_block_params(kp, IN_F, OUT_F)

    # Eval-mode forward (dropout = identity), matching FCBlock.eval()(x).
    out = jax.block_until_ready(fc_block(x, w1, b1, w2, b2, do=0.2, training=False))
    ref = fc_block_ref(x, w1, b1, w2, b2)
    assert out.shape == (B, OUT_F)
    assert jnp.allclose(out, ref, atol=1e-3, rtol=1e-3), \
        float(jnp.max(jnp.abs(out - ref)))

    # Training-mode forward with stochastic (inverted) dropout. The mask is derived from
    # jax.random bits in the wrapper, so it can be reproduced exactly for checking.
    do, seed = 0.2, 123
    out_train = jax.block_until_ready(
        fc_block(x, w1, b1, w2, b2, do=do, training=True, seed=seed))
    bits = jax.random.bits(jax.random.PRNGKey(seed), (B, OUT_F), dtype=jnp.uint32)
    thr = jnp.uint32(min(int(round(do * 4294967296.0)), 4294967295))
    ref_train = jnp.where(bits >= thr, ref / (1.0 - do), 0.0)
    assert out_train.shape == (B, OUT_F)
    assert jnp.allclose(out_train, ref_train, atol=1e-3, rtol=1e-3), \
        float(jnp.max(jnp.abs(out_train - ref_train)))

    print("KERNEL_OK")
</pallas_src>

<mosaic_0001>
module attributes {stable_mosaic.version = 11 : i64} {
  func.func @_fc_block_kernel(%arg0: i32, %arg1: i32, %arg2: memref<8x128xf32, #tpu.memory_space<vmem>>, %arg3: memref<128x128xf32, #tpu.memory_space<vmem>>, %arg4: memref<1x128xf32, #tpu.memory_space<vmem>>, %arg5: memref<128x128xf32, #tpu.memory_space<vmem>>, %arg6: memref<1x128xf32, #tpu.memory_space<vmem>>, %arg7: memref<8x128xf32, #tpu.memory_space<vmem>>, %arg8: memref<8x128xf32, #tpu.memory_space<vmem>>) attributes {dimension_semantics = [#tpu.dimension_semantics<parallel>, #tpu.dimension_semantics<arbitrary>], iteration_bounds = array<i64: 1, 1>, scalar_prefetch = 0 : i64, scratch_operands = 1 : i64, tpu.core_type = #tpu.core_type<tc>, window_params = [{transform_indices = @transform_0, window_bounds = array<i64: 8, 128>}, {pipeline_mode = #tpu.pipeline_mode<synchronous>, transform_indices = @transform_1, window_bounds = array<i64: 128, 128>}, {pipeline_mode = #tpu.pipeline_mode<synchronous>, transform_indices = @transform_2, window_bounds = array<i64: 1, 128>}, {transform_indices = @transform_3, window_bounds = array<i64: 128, 128>}, {transform_indices = @transform_4, window_bounds = array<i64: 1, 128>}, {transform_indices = @transform_5, window_bounds = array<i64: 8, 128>}]} {
    %c0_i32 = arith.constant 0 : i32
    %0 = arith.cmpi eq, %arg1, %c0_i32 : i32
    %1 = arith.extui %0 : i1 to i32
    %c0_i32_0 = arith.constant 0 : i32
    %2 = arith.cmpi ne, %1, %c0_i32_0 : i32
    scf.if %2 {
      %c0_10 = arith.constant 0 : index
      %c0_11 = arith.constant 0 : index
      %15 = vector.load %arg2[%c0_10, %c0_11] : memref<8x128xf32, #tpu.memory_space<vmem>>, vector<8x128xf32>
      %c0_12 = arith.constant 0 : index
      %c0_13 = arith.constant 0 : index
      %16 = vector.load %arg3[%c0_12, %c0_13] : memref<128x128xf32, #tpu.memory_space<vmem>>, vector<128x128xf32>
      %cst_14 = arith.constant dense<0.000000e+00> : vector<8x128xf32>
      %17 = tpu.matmul %15, %16, %cst_14 {dimension_numbers = #tpu.dot_dimension_numbers<[1], [0], [0], [1], [0, 0, 1, 1], [], []>} : vector<8x128xf32>, vector<128x128xf32>, vector<8x128xf32> -> vector<8x128xf32>
      %c0_15 = arith.constant 0 : index
      %c0_16 = arith.constant 0 : index
      %18 = vector.load %arg4[%c0_15, %c0_16] : memref<1x128xf32, #tpu.memory_space<vmem>>, vector<1x128xf32>
      %19 = vector.broadcast %18 : vector<1x128xf32> to vector<8x128xf32>
      %20 = arith.addf %17, %19 : vector<8x128xf32>
      %cst_17 = arith.constant 0.000000e+00 : f32
      %21 = vector.broadcast %cst_17 : f32 to vector<8x128xf32>
      %22 = arith.cmpf oge, %20, %21 : vector<8x128xf32>
      %cst_18 = arith.constant 0.00999999977 : f32
      %23 = vector.broadcast %cst_18 : f32 to vector<8x128xf32>
      %24 = arith.mulf %23, %20 : vector<8x128xf32>
      %25 = arith.select %22, %20, %24 : vector<8x128xi1>, vector<8x128xf32>
      %c0_19 = arith.constant 0 : index
      %c0_20 = arith.constant 0 : index
      %26 = vector.load %arg8[%c0_19, %c0_20] : memref<8x128xf32, #tpu.memory_space<vmem>>, vector<8x128xf32>
      tpu.vector_store %arg8[%c0_19, %c0_20], %25 {strides = array<i32>} : memref<8x128xf32, #tpu.memory_space<vmem>>, vector<8x128xf32>,
    } else {
    }
    %c0 = arith.constant 0 : index
    %c0_1 = arith.constant 0 : index
    %3 = vector.load %arg8[%c0, %c0_1] : memref<8x128xf32, #tpu.memory_space<vmem>>, vector<8x128xf32>
    %c0_2 = arith.constant 0 : index
    %c0_3 = arith.constant 0 : index
    %4 = vector.load %arg5[%c0_2, %c0_3] : memref<128x128xf32, #tpu.memory_space<vmem>>, vector<128x128xf32>
    %cst = arith.constant dense<0.000000e+00> : vector<8x128xf32>
    %5 = tpu.matmul %3, %4, %cst {dimension_numbers = #tpu.dot_dimension_numbers<[1], [0], [0], [1], [0, 0, 1, 1], [], []>} : vector<8x128xf32>, vector<128x128xf32>, vector<8x128xf32> -> vector<8x128xf32>
    %c0_4 = arith.constant 0 : index
    %c0_5 = arith.constant 0 : index
    %6 = vector.load %arg6[%c0_4, %c0_5] : memref<1x128xf32, #tpu.memory_space<vmem>>, vector<1x128xf32>
    %7 = vector.broadcast %6 : vector<1x128xf32> to vector<8x128xf32>
    %8 = arith.addf %5, %7 : vector<8x128xf32>
    %cst_6 = arith.constant 0.000000e+00 : f32
    %9 = vector.broadcast %cst_6 : f32 to vector<8x128xf32>
    %10 = arith.cmpf oge, %8, %9 : vector<8x128xf32>
    %cst_7 = arith.constant 0.00999999977 : f32
    %11 = vector.broadcast %cst_7 : f32 to vector<8x128xf32>
    %12 = arith.mulf %11, %8 : vector<8x128xf32>
    %13 = arith.select %10, %8, %12 : vector<8x128xi1>, vector<8x128xf32>
    %c0_8 = arith.constant 0 : index
    %c0_9 = arith.constant 0 : index
    %14 = vector.load %arg7[%c0_8, %c0_9] : memref<8x128xf32, #tpu.memory_space<vmem>>, vector<8x128xf32>
    tpu.vector_store %arg7[%c0_8, %c0_9], %13 {strides = array<i32>} : memref<8x128xf32, #tpu.memory_space<vmem>>, vector<8x128xf32>,
    return
  }
  func.func @transform_0(%arg0: i32, %arg1: i32) -> (i32, i32) {
    %c0_i32 = arith.constant 0 : i32
    %c0_i32_0 = arith.constant 0 : i32
    return %arg0, %c0_i32 : i32, i32
  }
  func.func @transform_1(%arg0: i32, %arg1: i32) -> (i32, i32) {
    %c0_i32 = arith.constant 0 : i32
    %c0_i32_0 = arith.constant 0 : i32
    %c0_i32_1 = arith.constant 0 : i32
    return %c0_i32, %c0_i32_0 : i32, i32
  }
  func.func @transform_2(%arg0: i32, %arg1: i32) -> (i32, i32) {
    %c0_i32 = arith.constant 0 : i32
    %c0_i32_0 = arith.constant 0 : i32
    %c0_i32_1 = arith.constant 0 : i32
    return %c0_i32, %c0_i32_0 : i32, i32
  }
  func.func @transform_3(%arg0: i32, %arg1: i32) -> (i32, i32) {
    %c0_i32 = arith.constant 0 : i32
    %c0_i32_0 = arith.constant 0 : i32
    return %c0_i32, %arg1 : i32, i32
  }
  func.func @transform_4(%arg0: i32, %arg1: i32) -> (i32, i32) {
    %c0_i32 = arith.constant 0 : i32
    %c0_i32_0 = arith.constant 0 : i32
    return %c0_i32, %arg1 : i32, i32
  }
  func.func @transform_5(%arg0: i32, %arg1: i32) -> (i32, i32) {
    %c0_i32 = arith.constant 0 : i32
    return %arg0, %arg1 : i32, i32
  }
}

</mosaic_0001>

<bundles_post_ra>
// kernel: tpu_custom_call.1
= control target key start
LH: loop header
LB: loop body
LE: loop exit
PB: predicated region body
PF: predicated region fallthrough
CT: control target
= control target key end

     0   :  { %10 = vsyncpa [#allocation4], 0  ;;  %s566_s0 = inlined_call_operand.hbm [shape: f32[8,128], index: 0, kind: input, shape index: {}]   ;;  %s567_s1 = inlined_call_operand.hbm [shape: f32[128,128], index: 1, kind: input, shape index: {}]   ;;  %s568_s2 = inlined_call_operand.vmem [shape: f32[1,128], index: 2, kind: input, shape index: {}]   ;;  %s569_s3 = inlined_call_operand.hbm [shape: f32[128,128], index: 3, kind: input, shape index: {}]   ;;  %s570_s4 = inlined_call_operand.vmem [shape: f32[1,128], index: 4, kind: input, shape index: {}]   ;;  %s571_s5 = inlined_call_operand.hbm [shape: f32[8,128], index: 5, kind: output, shape index: {}]  }
   0x1   :  { %11 = vsyncpa [#allocation7], 0 }
   0x2   :  { %12 = vsyncpa [#allocation5], 0  ;;  %s476_s18 = smov [#allocation6]  }
   0x3   :  { %s28_s19 = sshll.u32 %s476_s18, 4  ;;  %s29_s19 = int_to_ptr.vmem [resolvable:$true] %s28_s19 }
   0x4   :  { %s398_s20 = scalar_lea.vmem %s29_s19, 2048  ;;  %p403_p1 = scmp.lt.s32.totalorder %s29_s19, %s29_s19 }
   0x5   :  { %p399_p0 = scmp.ne.s32.totalorder %s29_s19, %s398_s20  ;;  %p404_p2 = scmp.lt.s32.totalorder %s398_s20, %s398_s20 }
   0x7   :  { %p405_p3 = por %p404_p2, %p403_p1 }
   0x9   :  { %p406_p4 = pnand %p405_p3, %p399_p0 }
   0xb   :  { %409 = shalt.err (!%p406_p4)
}
   0xc   :  { %s477_s21 = smov 128   ;;  %s478_s22 = smov 8  }
   0xd   :  { %34 = dma.hbm_to_vmem [thread:$0]  %s567_s1, 2048, %s29_s19, [#allocation7], %s477_s21, %s477_s21, %s478_s22  }
   0xe   :  { %s479_s25 = smov [#allocation3]   ;;  %s480_s27 = smov [#allocation8]  }
   0xf   :  { %s19_s26 = sshll.u32 %s479_s25, 4  ;;  %s42_s28 = sshll.u32 %s480_s27, 4  ;;  %s20_s26 = int_to_ptr.vmem [resolvable:$true] %s19_s26  ;;  %s43_s28 = int_to_ptr.vmem [resolvable:$true] %s42_s28 }
  0x10   :  { %s418_s29 = scalar_lea.vmem %s20_s26, 128  ;;  %p423_p6 = scmp.lt.s32.totalorder %s20_s26, %s20_s26 }
  0x11   :  { %p419_p5 = scmp.ne.s32.totalorder %s20_s26, %s418_s29  ;;  %p424_p7 = scmp.lt.s32.totalorder %s418_s29, %s418_s29 }
  0x13   :  { %p425_p8 = por %p424_p7, %p423_p6 }
  0x15   :  { %p426_p9 = pnand %p425_p8, %p419_p5 }
  0x17   :  { %429 = shalt.err (!%p426_p9)
}
  0x18   :  { %22 = dma.hbm_to_vmem [thread:$0]  %s566_s0, 128, %s20_s26, [#allocation4]  }
  0x19   :  { %s438_s7 = scalar_lea.vmem %s43_s28, 2048  ;;  %p443_p11 = scmp.lt.s32.totalorder %s43_s28, %s43_s28 }
  0x1a   :  { %p439_p10 = scmp.ne.s32.totalorder %s43_s28, %s438_s7  ;;  %p444_p12 = scmp.lt.s32.totalorder %s438_s7, %s438_s7 }
  0x1c   :  { %p445_p13 = por %p444_p12, %p443_p11 }
  0x1e   :  { %p446_p0 = pnand %p445_p13, %p439_p10 }
  0x20   :  { %449 = shalt.err (!%p446_p0)
}
  0x21   :  { %48 = dma.hbm_to_vmem [thread:$0]  %s569_s3, 2048, %s43_s28, [#allocation7], %s477_s21, %s477_s21, %s478_s22  }
  0x22   :  { %470 = dma.done.wait [#allocation4], 128  }
  0x23   :  { %471 = vsyncadd [#allocation4], 4294967168 }
  0x24   :  { %472 = dma.done.wait [#allocation7], 4096  }
  0x25   :  { %473 = vsyncadd [#allocation7], 4294963200  ;;  %v481_v0 = vmov 0.0   ;;  %vm482_vm0 = vmmov 0   ;;  %v80_v1 = vld [vmem:[#allocation6 + $0x78] sm:$0xff]  ;;  %v79_v2 = vld [vmem:[#allocation6 + $0x70] sm:$0xff] }
  0x26   :  { %312 = vmatprep.subr.mxu0 %v481_v0  ;;  %344 = vmatprep.mubr.msk.f32.mxu0 %vm482_vm0, %v481_v0  ;;  %v78_v3 = vld [vmem:[#allocation6 + $0x68] sm:$0xff]  ;;  %v77_v4 = vld [vmem:[#allocation6 + $0x60] sm:$0xff]  ;;  %v178_v5 = vld [vmem:[#allocation8 + $0x78] sm:$0xff]  ;;  %s483_s11 = smov [#allocation9]  }
  0x27   :  { %347 = vmatprep.subr.mxu1 %v481_v0  ;;  %379 = vmatprep.mubr.msk.f32.mxu1 %vm482_vm0, %v481_v0  ;;  %v76_v6 = vld [vmem:[#allocation6 + $0x58] sm:$0xff]  ;;  %v177_v7 = vld [vmem:[#allocation8 + $0x70] sm:$0xff]  ;;  %v176_v8 = vld [vmem:[#allocation8 + $0x68] sm:$0xff]  ;;  %s266_s12 = sshll.u32 %s483_s11, 4  ;;  %s267_s12 = int_to_ptr.vmem [resolvable:$true] %s266_s12 }
  0x28   :  { %313 = vmatpush3.msra.mxu0 %v80_v1  ;;  %348 = vmatpush3.msra.mxu1 %v178_v5  ;;  %v75_v9 = vld [vmem:[#allocation6 + $0x50] sm:$0xff]  ;;  %v175_v10 = vld [vmem:[#allocation8 + $0x60] sm:$0xff]  ;;  %v74_v11 = vld [vmem:[#allocation6 + $0x48] sm:$0xff]  ;;  %p455_p2 = scmp.lt.s32.totalorder %s267_s12, %s267_s12 }
  0x29   :  { %314 = vmatprep.subr.mxu0 %v481_v0  ;;  %349 = vmatprep.subr.mxu1 %v481_v0  ;;  %v174_v12 = vld [vmem:[#allocation8 + $0x58] sm:$0xff]  ;;  %v73_v13 = vld [vmem:[#allocation6 + $0x40] sm:$0xff]  ;;  %v173_v14 = vld [vmem:[#allocation8 + $0x50] sm:$0xff] }
  0x2a   :  { %315 = vmatpush3.msra.mxu0 %v79_v2  ;;  %350 = vmatpush3.msra.mxu1 %v177_v7  ;;  %v72_v15 = vld [vmem:[#allocation6 + $0x38] sm:$0xff]  ;;  %v172_v16 = vld [vmem:[#allocation8 + $0x48] sm:$0xff]  ;;  %v71_v17 = vld [vmem:[#allocation6 + $0x30] sm:$0xff] }
  0x2b   :  { %316 = vmatprep.subr.mxu0 %v481_v0  ;;  %351 = vmatprep.subr.mxu1 %v481_v0  ;;  %v171_v18 = vld [vmem:[#allocation8 + $0x40] sm:$0xff]  ;;  %v70_v19 = vld [vmem:[#allocation6 + $0x28] sm:$0xff]  ;;  %v170_v20 = vld [vmem:[#allocation8 + $0x38] sm:$0xff] }
  0x2c   :  { %317 = vmatpush3.msra.mxu0 %v78_v3  ;;  %352 = vmatpush3.msra.mxu1 %v176_v8  ;;  %v69_v21 = vld [vmem:[#allocation6 + $0x20] sm:$0xff]  ;;  %v169_v22 = vld [vmem:[#allocation8 + $0x30] sm:$0xff]  ;;  %v68_v23 = vld [vmem:[#allocation6 + $0x18] sm:$0xff] }
  0x2d   :  { %318 = vmatprep.subr.mxu0 %v481_v0  ;;  %353 = vmatprep.subr.mxu1 %v481_v0  ;;  %v168_v24 = vld [vmem:[#allocation8 + $0x28] sm:$0xff]  ;;  %v67_v25 = vld [vmem:[#allocation6 + $0x10] sm:$0xff]  ;;  %v167_v26 = vld [vmem:[#allocation8 + $0x20] sm:$0xff] }
  0x2e   :  { %319 = vmatpush3.msra.mxu0 %v77_v4  ;;  %354 = vmatpush3.msra.mxu1 %v175_v10  ;;  %v66_v27 = vld [vmem:[#allocation6 + $0x8] sm:$0xff]  ;;  %v166_v28 = vld [vmem:[#allocation8 + $0x18] sm:$0xff]  ;;  %v65_v29 = vld [vmem:[#allocation6] sm:$0xff] }
  0x2f   :  { %320 = vmatprep.subr.mxu0 %v481_v0  ;;  %355 = vmatprep.subr.mxu1 %v481_v0  ;;  %v64_v30 = vld [vmem:[#allocation3] sm:$0xff]  ;;  %v165_v31 = vld [vmem:[#allocation8 + $0x10] sm:$0xff]  ;;  %v164_v32 = vld [vmem:[#allocation8 + $0x8] sm:$0xff] }
  0x30   :  { %321 = vmatpush3.msra.mxu0 %v76_v6  ;;  %356 = vmatpush3.msra.mxu1 %v174_v12  ;;  %v163_v33 = vld [vmem:[#allocation8] sm:$0xff]  ;;  %v276_v34 = vld [vmem:[%s568_s2] ss:$0 sm:$0xff]  ;;  %s450_s2 = scalar_lea.vmem %s267_s12, 128 }
  0x31   :  { %322 = vmatprep.subr.mxu0 %v481_v0  ;;  %357 = vmatprep.subr.mxu1 %v481_v0  ;;  %v277_v40 = vld [vmem:[%s570_s4] ss:$0 sm:$0xff]  ;;  %p451_p1 = scmp.ne.s32.totalorder %s267_s12, %s450_s2  ;;  %p456_p3 = scmp.lt.s32.totalorder %s450_s2, %s450_s2 }
  0x32   :  { %323 = vmatpush3.msra.mxu0 %v75_v9  ;;  %358 = vmatpush3.msra.mxu1 %v173_v14 }
  0x33   :  { %324 = vmatprep.subr.mxu0 %v481_v0  ;;  %359 = vmatprep.subr.mxu1 %v481_v0  ;;  %p457_p4 = por %p456_p3, %p455_p2 }
  0x34   :  { %325 = vmatpush3.msra.mxu0 %v74_v11  ;;  %360 = vmatpush3.msra.mxu1 %v172_v16 }
  0x35   :  { %326 = vmatprep.subr.mxu0 %v481_v0  ;;  %361 = vmatprep.subr.mxu1 %v481_v0  ;;  %p458_p5 = pnand %p457_p4, %p451_p1 }
  0x36   :  { %327 = vmatpush3.msra.mxu0 %v73_v13  ;;  %362 = vmatpush3.msra.mxu1 %v171_v18 }
  0x37   :  { %328 = vmatprep.subr.mxu0 %v481_v0  ;;  %363 = vmatprep.subr.mxu1 %v481_v0 }
  0x38   :  { %329 = vmatpush3.msra.mxu0 %v72_v15  ;;  %364 = vmatpush3.msra.mxu1 %v170_v20 }
  0x39   :  { %330 = vmatprep.subr.mxu0 %v481_v0  ;;  %365 = vmatprep.subr.mxu1 %v481_v0 }
  0x3a   :  { %331 = vmatpush3.msra.mxu0 %v71_v17  ;;  %366 = vmatpush3.msra.mxu1 %v169_v22 }
  0x3b   :  { %332 = vmatprep.subr.mxu0 %v481_v0  ;;  %367 = vmatprep.subr.mxu1 %v481_v0 }
  0x3c   :  { %333 = vmatpush3.msra.mxu0 %v70_v19  ;;  %368 = vmatpush3.msra.mxu1 %v168_v24 }
  0x3d   :  { %334 = vmatprep.subr.mxu0 %v481_v0  ;;  %369 = vmatprep.subr.mxu1 %v481_v0 }
  0x3e   :  { %335 = vmatpush3.msra.mxu0 %v69_v21  ;;  %370 = vmatpush3.msra.mxu1 %v167_v26 }
  0x3f   :  { %336 = vmatprep.subr.mxu0 %v481_v0  ;;  %371 = vmatprep.subr.mxu1 %v481_v0 }
  0x40   :  { %337 = vmatpush3.msra.mxu0 %v68_v23  ;;  %372 = vmatpush3.msra.mxu1 %v166_v28 }
  0x41   :  { %338 = vmatprep.subr.mxu0 %v481_v0  ;;  %373 = vmatprep.subr.mxu1 %v481_v0 }
  0x42   :  { %339 = vmatpush3.msra.mxu0 %v67_v25  ;;  %374 = vmatpush3.msra.mxu1 %v165_v31 }
  0x43   :  { %340 = vmatprep.subr.mxu0 %v481_v0  ;;  %375 = vmatprep.subr.mxu1 %v481_v0 }
  0x44   :  { %341 = vmatpush3.msra.mxu0 %v66_v27  ;;  %376 = vmatpush3.msra.mxu1 %v164_v32 }
  0x45   :  { %342 = vmatprep.subr.mxu0 %v481_v0  ;;  %377 = vmatprep.subr.mxu1 %v481_v0 }
  0x46   :  { %343 = vmatpush3.msra.mxu0 %v65_v29  ;;  %378 = vmatpush3.msra.mxu1 %v163_v33 }
  0x47   :  { %345 = vmatmul.mubr.f32.vlgmr.msra.gmra.mxu0 %v64_v30 }
 0x107   :  { %v154_v35 = vpop.f32.mrf.mxu0 }
 0x108   :  { %v155_v36 = vadd.f32 %v276_v34, %v154_v35 }
 0x109   :  { %v346_v37 = vpop.f32.mrf.mxu0 }
 0x10a   :  { %v159_v38 = vmul.f32 0.01, %v155_v36  ;;  %vm158_vm1 = vcmp.ge.f32.partialorder %v155_v36, 0.0 }
 0x10c   :  { %v160_v39 = vsel %vm158_vm1, %v155_v36, %v159_v38 }
 0x10d   :  { %380 = vmatmul.mubr.f32.vlgmr.msra.gmra.mxu1 %v160_v39 }
 0x1cd   :  { %v252_v41 = vpop.f32.mrf.mxu1 }
 0x1ce   :  { %v253_v42 = vadd.f32 %v277_v40, %v252_v41 }
 0x1cf   :  { %v381_v43 = vpop.f32.mrf.mxu1 }
 0x1d0   :  { %v257_v44 = vmul.f32 0.01, %v253_v42  ;;  %vm256_vm2 = vcmp.ge.f32.partialorder %v253_v42, 0.0 }
 0x1d2   :  { %v258_v45 = vsel %vm256_vm2, %v253_v42, %v257_v44 }
 0x1d3   :  { %259 = vst [vmem:[#allocation9] sm:$0xff] %v258_v45 }
 0x1d4   :  { %461 = shalt.err (!%p458_p5)
}
 0x1d5   :  { %269 = dma.vmem_to_hbm [thread:$0]  %s267_s12, 128, %s571_s5, [#allocation5]  }
 0x1d6   :  { %474 = dma.done.wait [#allocation5], 128  }
 0x1d7   :  { %475 = vsyncadd [#allocation5], 4294967168 }
 0x1d8   :  { %273 = vsyncpa [#allocation4], 1 }
 0x1d9   :  { %274 = vsyncpa [#allocation7], 1 }
 0x1da   :  { %275 = vsyncpa [#allocation5], 1 }

</bundles_post_ra>
